<compile_context>
chip_gen: v5e
topology: v5e:2x2
jax: 0.10.0
libtpu: 0.0.40
codegen_flags: <defaults>
</compile_context>

<pallas_src>
import jax
import jax.numpy as jnp
from jax.experimental import pallas as pl
from jax.experimental.pallas import tpu as pltpu

# Module hyperparameters: alpha/beta/gamma/class_weights are unused by the
# reference forward (alpha is recomputed dynamically); epsilon is used.
EPSILON = 1e-7

LANE = 128
TM_MAX = 1024     # rows per grid step; multiple of 16 for the bf16 label tiles
NUM_CORES = 2     # leading "parallel" grid axis (megacore split on v7x)


def _round_up(x, m):
    return ((x + m - 1) // m) * m


def _ftl_kernel(l0_ref, l1_ref, y_ref, out_ref):
    i = pl.program_id(1)

    @pl.when(i == 0)
    def _():
        out_ref[...] = jnp.zeros_like(out_ref)

    l0 = l0_ref[...]
    l1 = l1_ref[...]
    y = y_ref[...].astype(jnp.float32)

    # 2-class softmax along channel dim:
    #   p1 = exp(l1) / (exp(l0) + exp(l1)) = 1 / (1 + exp(l0 - l1))
    # Padded tail has l0 = 0, l1 = -1e4 -> exp overflows to inf -> p1 == 0.
    p1 = pl.reciprocal(1.0 + jnp.exp(l0 - l1), approx=False)

    tm = l0.shape[0]

    def fold(x):
        # (tm, 128) -> (8, 128): cross-vreg VPU adds only (no per-step XLU reduce).
        return jnp.sum(x.reshape(tm // 8, 8, LANE), axis=0)

    out_ref[0, 0] += fold(p1)        # sum(p1)   = tp + fp over valid elements
    out_ref[0, 1] += fold(p1 * y)    # tp        = sum(p1 * y)
    out_ref[0, 2] += fold(y)         # sum(y)    = tp + fn (also feeds dynamic alpha)


def focal_tversky_loss(y_pred, y_true, epsilon=EPSILON):
    """y_pred: (N, 2, H, W) logits; y_true: (N, H, W) binary labels."""
    N, C, H, W = y_pred.shape
    assert C == 2, "kernel specialized for num_classes=2 (as used by forward)"

    l0 = y_pred[:, 0].reshape(-1).astype(jnp.float32)
    l1 = y_pred[:, 1].reshape(-1).astype(jnp.float32)
    y = y_true.reshape(-1).astype(jnp.bfloat16)   # binary labels: half the bytes

    total = l0.shape[0]
    rows = -(-total // LANE)                       # cdiv
    tm = min(TM_MAX, _round_up(rows, 16))          # adaptive tile for tiny inputs
    rows_padded = _round_up(max(rows, 1), NUM_CORES * tm)
    pad = rows_padded * LANE - total
    if pad:
        l0 = jnp.pad(l0, (0, pad), constant_values=0.0)
        l1 = jnp.pad(l1, (0, pad), constant_values=-1e4)   # -> p1 == 0 in padding
        y = jnp.pad(y, (0, pad), constant_values=0)

    l0 = l0.reshape(rows_padded, LANE)
    l1 = l1.reshape(rows_padded, LANE)
    y = y.reshape(rows_padded, LANE)

    n_inner = rows_padded // (NUM_CORES * tm)

    tile_spec = pl.BlockSpec((tm, LANE), lambda c, i: (c * n_inner + i, 0))
    partials = pl.pallas_call(
        _ftl_kernel,
        out_shape=jax.ShapeDtypeStruct((NUM_CORES, 3, 8, LANE), jnp.float32),
        grid_spec=pltpu.PrefetchScalarGridSpec(
            num_scalar_prefetch=0,
            grid=(NUM_CORES, n_inner),
            in_specs=[tile_spec, tile_spec, tile_spec],      # l0, l1, y
            out_specs=pl.BlockSpec((1, 3, 8, LANE), lambda c, i: (c, 0, 0, 0)),
        ),
        compiler_params=pltpu.CompilerParams(
            dimension_semantics=("parallel", "arbitrary")),
    )(l0, l1, y)

    # Single final cross-lane/core reduction + scalar epilogue (tiny).
    sums = jnp.sum(partials, axis=(0, 2, 3))       # [sum(p1), tp, sum(y)]
    s_p1, tp, s_y = sums[0], sums[1], sums[2]
    fp = s_p1 - tp                                  # sum(p1 * (1 - y))
    fn = s_y - tp                                   # sum((1 - p1) * y)
    alpha = 1.0 + (1.0 - s_y / float(total))
    return (tp + epsilon) / (tp + fp + alpha * fn + epsilon)


def _reference(y_pred, y_true):
    flat = y_true.reshape(-1).astype(jnp.float32)
    alpha = 1.0 + (1.0 - jnp.sum(flat) / flat.shape[0])
    probs = jax.nn.softmax(y_pred.astype(jnp.float32), axis=1)
    p1 = probs[:, 1]
    yt = y_true.astype(jnp.float32)
    tp = jnp.sum(p1 * yt)
    fp = jnp.sum(p1 * (1.0 - yt))
    fn = jnp.sum((1.0 - p1) * yt)
    return (tp + EPSILON) / (tp + fp + alpha * fn + EPSILON)


if __name__ == "__main__":
    key = jax.random.PRNGKey(0)
    k1, k2 = jax.random.split(key)
    N, C, H, W = 2, 2, 16, 16
    y_pred = jax.random.normal(k1, (N, C, H, W), dtype=jnp.float32)
    y_true = jax.random.bernoulli(k2, p=0.3, shape=(N, H, W)).astype(jnp.float32)

    out = focal_tversky_loss(y_pred, y_true)
    out = jax.block_until_ready(out)

    ref = _reference(y_pred, y_true)
    assert jnp.allclose(out, ref, rtol=1e-5, atol=1e-6), (out, ref)
    print("KERNEL_OK")
</pallas_src>

<mosaic_0001>
module attributes {stable_mosaic.version = 11 : i64} {
  func.func @_ftl_kernel(%arg0: i32, %arg1: i32, %arg2: memref<16x128xf32, #tpu.memory_space<vmem>>, %arg3: memref<16x128xf32, #tpu.memory_space<vmem>>, %arg4: memref<16x128xbf16, #tpu.memory_space<vmem>>, %arg5: memref<1x3x8x128xf32, #tpu.memory_space<vmem>>) attributes {dimension_semantics = [#tpu.dimension_semantics<parallel>, #tpu.dimension_semantics<arbitrary>], iteration_bounds = array<i64: 2, 1>, scalar_prefetch = 0 : i64, scratch_operands = 0 : i64, tpu.core_type = #tpu.core_type<tc>, window_params = [{transform_indices = @transform_0, window_bounds = array<i64: 16, 128>}, {transform_indices = @transform_1, window_bounds = array<i64: 16, 128>}, {transform_indices = @transform_2, window_bounds = array<i64: 16, 128>}, {transform_indices = @transform_3, window_bounds = array<i64: 1, 3, 8, 128>}]} {
    %c0_i32 = arith.constant 0 : i32
    %0 = arith.cmpi eq, %arg1, %c0_i32 : i32
    %1 = arith.extui %0 : i1 to i32
    %c0_i32_0 = arith.constant 0 : i32
    %2 = arith.cmpi ne, %1, %c0_i32_0 : i32
    scf.if %2 {
      %cst_31 = arith.constant 0.000000e+00 : f32
      %37 = vector.broadcast %cst_31 : f32 to vector<1x3x8x128xf32>
      %c0_32 = arith.constant 0 : index
      %c0_33 = arith.constant 0 : index
      %c0_34 = arith.constant 0 : index
      %c0_35 = arith.constant 0 : index
      %38 = vector.load %arg5[%c0_32, %c0_33, %c0_34, %c0_35] : memref<1x3x8x128xf32, #tpu.memory_space<vmem>>, vector<1x3x8x128xf32>
      tpu.vector_store %arg5[%c0_32, %c0_33, %c0_34, %c0_35], %37 {strides = array<i32>} : memref<1x3x8x128xf32, #tpu.memory_space<vmem>>, vector<1x3x8x128xf32>,
    } else {
    }
    %c0 = arith.constant 0 : index
    %c0_1 = arith.constant 0 : index
    %3 = vector.load %arg2[%c0, %c0_1] : memref<16x128xf32, #tpu.memory_space<vmem>>, vector<16x128xf32>
    %c0_2 = arith.constant 0 : index
    %c0_3 = arith.constant 0 : index
    %4 = vector.load %arg3[%c0_2, %c0_3] : memref<16x128xf32, #tpu.memory_space<vmem>>, vector<16x128xf32>
    %c0_4 = arith.constant 0 : index
    %c0_5 = arith.constant 0 : index
    %5 = vector.load %arg4[%c0_4, %c0_5] : memref<16x128xbf16, #tpu.memory_space<vmem>>, vector<16x128xbf16>
    %6 = arith.extf %5 : vector<16x128xbf16> to vector<16x128xf32>
    %7 = arith.subf %3, %4 : vector<16x128xf32>
    %8 = math.exp %7 : vector<16x128xf32>
    %cst = arith.constant 1.000000e+00 : f32
    %9 = vector.broadcast %cst : f32 to vector<16x128xf32>
    %10 = arith.addf %9, %8 : vector<16x128xf32>
    %11 = tpu.reciprocal %10 : vector<16x128xf32> -> vector<16x128xf32>
    %c0_6 = arith.constant 0 : index
    %c0_7 = arith.constant 0 : index
    %c0_8 = arith.constant 0 : index
    %c0_9 = arith.constant 0 : index
    %12 = vector.load %arg5[%c0_6, %c0_7, %c0_8, %c0_9] : memref<1x3x8x128xf32, #tpu.memory_space<vmem>>, vector<1x1x8x128xf32>
    %13 = vector.shape_cast %12 : vector<1x1x8x128xf32> to vector<8x128xf32>
    %14 = vector.shape_cast %11 : vector<16x128xf32> to vector<2x8x128xf32>
    %cst_10 = arith.constant dense<0.000000e+00> : vector<8x128xf32>
    %15 = vector.multi_reduction <add>, %14, %cst_10 [0] : vector<2x8x128xf32> to vector<8x128xf32>
    %16 = arith.addf %13, %15 : vector<8x128xf32>
    %c0_11 = arith.constant 0 : index
    %c0_12 = arith.constant 0 : index
    %c0_13 = arith.constant 0 : index
    %c0_14 = arith.constant 0 : index
    %17 = vector.load %arg5[%c0_11, %c0_12, %c0_13, %c0_14] : memref<1x3x8x128xf32, #tpu.memory_space<vmem>>, vector<1x1x8x128xf32>
    %18 = vector.shape_cast %17 : vector<1x1x8x128xf32> to vector<8x128xf32>
    %19 = vector.shape_cast %16 : vector<8x128xf32> to vector<1x1x8x128xf32>
    tpu.vector_store %arg5[%c0_11, %c0_12, %c0_13, %c0_14], %19 {strides = array<i32>} : memref<1x3x8x128xf32, #tpu.memory_space<vmem>>, vector<1x1x8x128xf32>,
    %c0_15 = arith.constant 0 : index
    %c1 = arith.constant 1 : index
    %c0_16 = arith.constant 0 : index
    %c0_17 = arith.constant 0 : index
    %20 = vector.load %arg5[%c0_15, %c1, %c0_16, %c0_17] : memref<1x3x8x128xf32, #tpu.memory_space<vmem>>, vector<1x1x8x128xf32>
    %21 = vector.shape_cast %20 : vector<1x1x8x128xf32> to vector<8x128xf32>
    %22 = arith.mulf %11, %6 : vector<16x128xf32>
    %23 = vector.shape_cast %22 : vector<16x128xf32> to vector<2x8x128xf32>
    %cst_18 = arith.constant dense<0.000000e+00> : vector<8x128xf32>
    %24 = vector.multi_reduction <add>, %23, %cst_18 [0] : vector<2x8x128xf32> to vector<8x128xf32>
    %25 = arith.addf %21, %24 : vector<8x128xf32>
    %c0_19 = arith.constant 0 : index
    %c1_20 = arith.constant 1 : index
    %c0_21 = arith.constant 0 : index
    %c0_22 = arith.constant 0 : index
    %26 = vector.load %arg5[%c0_19, %c1_20, %c0_21, %c0_22] : memref<1x3x8x128xf32, #tpu.memory_space<vmem>>, vector<1x1x8x128xf32>
    %27 = vector.shape_cast %26 : vector<1x1x8x128xf32> to vector<8x128xf32>
    %28 = vector.shape_cast %25 : vector<8x128xf32> to vector<1x1x8x128xf32>
    tpu.vector_store %arg5[%c0_19, %c1_20, %c0_21, %c0_22], %28 {strides = array<i32>} : memref<1x3x8x128xf32, #tpu.memory_space<vmem>>, vector<1x1x8x128xf32>,
    %c0_23 = arith.constant 0 : index
    %c2 = arith.constant 2 : index
    %c0_24 = arith.constant 0 : index
    %c0_25 = arith.constant 0 : index
    %29 = vector.load %arg5[%c0_23, %c2, %c0_24, %c0_25] : memref<1x3x8x128xf32, #tpu.memory_space<vmem>>, vector<1x1x8x128xf32>
    %30 = vector.shape_cast %29 : vector<1x1x8x128xf32> to vector<8x128xf32>
    %31 = vector.shape_cast %6 : vector<16x128xf32> to vector<2x8x128xf32>
    %cst_26 = arith.constant dense<0.000000e+00> : vector<8x128xf32>
    %32 = vector.multi_reduction <add>, %31, %cst_26 [0] : vector<2x8x128xf32> to vector<8x128xf32>
    %33 = arith.addf %30, %32 : vector<8x128xf32>
    %c0_27 = arith.constant 0 : index
    %c2_28 = arith.constant 2 : index
    %c0_29 = arith.constant 0 : index
    %c0_30 = arith.constant 0 : index
    %34 = vector.load %arg5[%c0_27, %c2_28, %c0_29, %c0_30] : memref<1x3x8x128xf32, #tpu.memory_space<vmem>>, vector<1x1x8x128xf32>
    %35 = vector.shape_cast %34 : vector<1x1x8x128xf32> to vector<8x128xf32>
    %36 = vector.shape_cast %33 : vector<8x128xf32> to vector<1x1x8x128xf32>
    tpu.vector_store %arg5[%c0_27, %c2_28, %c0_29, %c0_30], %36 {strides = array<i32>} : memref<1x3x8x128xf32, #tpu.memory_space<vmem>>, vector<1x1x8x128xf32>,
    return
  }
  func.func @transform_0(%arg0: i32, %arg1: i32) -> (i32, i32) {
    %c1_i32 = arith.constant 1 : i32
    %0 = arith.muli %arg0, %c1_i32 : i32
    %1 = arith.addi %0, %arg1 : i32
    %c0_i32 = arith.constant 0 : i32
    %c0_i32_0 = arith.constant 0 : i32
    return %1, %c0_i32 : i32, i32
  }
  func.func @transform_1(%arg0: i32, %arg1: i32) -> (i32, i32) {
    %c1_i32 = arith.constant 1 : i32
    %0 = arith.muli %arg0, %c1_i32 : i32
    %1 = arith.addi %0, %arg1 : i32
    %c0_i32 = arith.constant 0 : i32
    %c0_i32_0 = arith.constant 0 : i32
    return %1, %c0_i32 : i32, i32
  }
  func.func @transform_2(%arg0: i32, %arg1: i32) -> (i32, i32) {
    %c1_i32 = arith.constant 1 : i32
    %0 = arith.muli %arg0, %c1_i32 : i32
    %1 = arith.addi %0, %arg1 : i32
    %c0_i32 = arith.constant 0 : i32
    %c0_i32_0 = arith.constant 0 : i32
    return %1, %c0_i32 : i32, i32
  }
  func.func @transform_3(%arg0: i32, %arg1: i32) -> (i32, i32, i32, i32) {
    %c0_i32 = arith.constant 0 : i32
    %c0_i32_0 = arith.constant 0 : i32
    %c0_i32_1 = arith.constant 0 : i32
    %c0_i32_2 = arith.constant 0 : i32
    return %arg0, %c0_i32, %c0_i32_0, %c0_i32_1 : i32, i32, i32, i32
  }
}

</mosaic_0001>

<bundles_post_ra>
// kernel: tpu_custom_call.1
= control target key start
LH: loop header
LB: loop body
LE: loop exit
PB: predicated region body
PF: predicated region fallthrough
CT: control target
= control target key end

     0   :  { %s1003_s0 = inlined_call_operand.hbm [shape: f32[32,128], index: 0, kind: input, shape index: {}]   ;;  %s1004_s1 = inlined_call_operand.hbm [shape: f32[32,128], index: 1, kind: input, shape index: {}]   ;;  %s1005_s2 = inlined_call_operand.hbm [shape: bf16[32,128], index: 2, kind: input, shape index: {}]   ;;  %s1006_s3 = inlined_call_operand.hbm [shape: f32[2,3,8,128], index: 3, kind: output, shape index: {}]  }
   0x1   :  { %1013 = sst [smem:[#allocation18_spill]] %s1004_s1 }
   0x2   :  { %8 = vsyncpa [#allocation3], 0 }
   0x3   :  { %10 = vsyncpa [#allocation3 + $0x1], 0 }
   0x4   :  { %11 = vsyncpa [#allocation6], 0 }
   0x5   :  { %13 = vsyncpa [#allocation6 + $0x1], 0 }
   0x6   :  { %14 = vsyncpa [#allocation4], 0 }
   0x7   :  { %16 = vsyncpa [#allocation4 + $0x1], 0  ;;  %s833_s12 = smov 0   ;;  %s835_s13 = smov 0  }
   0x8   :  { %s837_s14 = smov 0   ;;  %s839_s15 = smov 0  }
   0x9   :  { %s841_s16 = smov 0   ;;  %s843_s17 = smov 0  }
   0xa LB: > { %1014 = sst [smem:[#allocation12_spill]] %s785_s12  ;;  %s864_s18 = sadd.s32 4294967295, %s805_s17   ;;  %s805_s17 = sphi %s843_s17, %s22_s17   ;;  %s801_s16 = sphi %s841_s16, %s1036_s16   ;;  %s797_s15 = sphi %s839_s15, %s1035_s15   ;;  %s793_s14 = sphi %s837_s14, %s1031_s14   ;;  %s789_s13 = sphi %s835_s13, %s1034_s13   ;;  %s785_s12 = sphi %s833_s12, %s1033_s12  }
   0xb   : > { %1015 = sst [smem:[#allocation13_spill]] %s793_s14  ;;  %s510_s19 = sadd.s32 4294967294, %s805_s17  }
   0xc   : > { %1016 = sst [smem:[#allocation14_spill]] %s805_s17  ;;  %s34_s20 = sadd.s32 1, %s801_s16 }
   0xd   : > { %s43_s21 = sadd.s32 1, %s793_s14  ;;  %p36_p0 = scmp.ge.s32.totalorder %s34_s20, 2 }
   0xe   : > { %p50_p1 = scmp.ne.s32.totalorder %s793_s14, %s789_s13  ;;  %p51_p2 = scmp.eq.s32.totalorder %s805_s17, 0 }
   0xf   : > { %p56_p3 = scmp.ne.s32.totalorder %s789_s13, %s785_s12  ;;  %s1038_s20 = smov (%p36_p0, %s34_s20), 0 }
  0x10   : > { %1017 = sst [smem:[#allocation15_spill]] %s1038_s20  ;;  %p876_p4 = por %p51_p2, %p50_p1 }
  0x11   : > { %p57_p5 = scmp.eq.s32.totalorder %s864_s18, 0  ;;  %s40_s23 = ssub.s32 %s801_s16, %s1038_s20 }
  0x12   : > { %p136_p6 = scmp.eq.s32.totalorder %s864_s18, 1  ;;  %p41_p7 = scmp.eq.s32.totalorder %s40_s23, 0 }
  0x13   : > { %p884_p8 = por %p57_p5, %p56_p3  ;;  %p142_p10 = scmp.eq.s32.totalorder %s510_s19, 1 }
  0x14   : > { %p888_p9 = por %p136_p6, %p50_p1  ;;  %p512_p12 = scmp.ge.s32.totalorder %s805_s17, 2 }
  0x15   : > { %s893_s26 = scalar_select %p41_p7, %s793_s14, %s43_s21  }
  0x16   : > { %p895_p11 = por %p142_p10, %p56_p3  ;;  %p564_p13 = scmp.lt.s32.totalorder %s805_s17, 2 }
  0x17   : > { %1021 = sst [smem:[#allocation16_spill]] %s893_s26  ;;  %s902_s28 = sand.u32 1, %s793_s14  }
  0x18   : > { %s1022_s27 = scalar_select %p895_p11, 1, 0 }
  0x19   : > { %s513_s29 = sshll.u32 %s902_s28, 4  ;;  %s533_s30 = sshll.u32 %s801_s16, 4 }
  0x1a   : > { %1023 = sst [smem:[#allocation17_spill]] %s1022_s27  ;;  %p908_p0 = pnand %p564_p13, %p876_p4 }
  0x1b   : > { %s185_s5 = sand.u32 1, %s805_s17   ;;  %s1025_s1 = sld [smem:[#allocation18_spill]] }
  0x1c   : > { %s189_s10 = scalar_lea.vmem [#allocation5], %s513_s29  ;;  %s916_s19 = scalar_lea.sflag [#allocation6], %s185_s5 }
  0x1d   : > { %s198_s11 = sshll.u32 %s189_s10, 4  ;;  %s807_s21 = smov 128   ;;  %s199_s11 = int_to_ptr.vmem [resolvable:$true] %s198_s11 }
  0x1e   : > { %s808_s22 = smov 8   ;;  %p522_p1 = scmp.ge.s32.totalorder %s805_s17, 1 }
  0x1f   : > { %p229_p2 = scmp.lt.s32.totalorder %s805_s17, 3  ;;  %s163_s20 = scalar_lea.sflag [#allocation3], %s902_s28 }
  0x21   : > { %s195_s8 = scalar_lea.hbm %s1025_s1, %s533_s30  ;;  %p923_p3 = pnand %p522_p1, %p229_p2 }
  0x22   : > { %s196_s9 = sshll.u32 %s195_s8, 4  ;;  %s172_s8 = scalar_lea.hbm %s1003_s0, %s533_s30  ;;  %s197_s9 = int_to_ptr.hbm [resolvable:$true] %s196_s9 }
  0x23   : > { %556 = dma.hbm_to_vmem [thread:$0]  (!%p908_p0), %s197_s9, 256, %s199_s11, %s916_s19, %s807_s21, %s807_s21, %s808_s22  }
  0x24   : > { %s173_s10 = sshll.u32 %s172_s8, 4  ;;  %s166_s1 = scalar_lea.vmem [#allocation2], %s513_s29  ;;  %s174_s10 = int_to_ptr.hbm [resolvable:$true] %s173_s10 }
  0x25   : > { %s175_s5 = sshll.u32 %s166_s1, 4  ;;  %s519_s9 = sshll.u32 %s902_s28, 3  ;;  %s176_s5 = int_to_ptr.vmem [resolvable:$true] %s175_s5 }
  0x26   : > { %553 = dma.hbm_to_vmem [thread:$0]  (!%p908_p0), %s174_s10, 256, %s176_s5, %s163_s20, %s807_s21, %s807_s21, %s808_s22  }
  0x27   : > { %s535_s11 = sshll.u32 %s801_s16, 3  ;;  %s212_s12 = scalar_lea.vmem [#allocation7], %s519_s9 }
  0x28   : > { %s218_s17 = scalar_lea.hbm %s1005_s2, %s535_s11  ;;  %s221_s6 = sshll.u32 %s212_s12, 4  ;;  %s222_s6 = int_to_ptr.vmem [resolvable:$true] %s221_s6 }
  0x29   : > { %s219_s27 = sshll.u32 %s218_s17, 4  ;;  %s809_s29 = smov 64   ;;  %s220_s27 = int_to_ptr.hbm [resolvable:$true] %s219_s27 }
  0x2a   : > { %s810_s30 = smov 4   ;;  %233 = sbr.rel (%p923_p3) target bundleno = 92 (0x5c), region = 32 }
  0x2b   : > { %559 = dma.hbm_to_vmem [thread:$0]  (!%p908_p0), %s220_s27, 128, %s222_s6, %s916_s19, %s809_s29, %s809_s29, %s810_s30  }
  0x2c   : > { %s944_s1 = sand.u32 (!%p923_p3), 1, %s789_s13  }
  0x2d   : > { %s523_s14 = sshll.u32 (!%p923_p3), %s944_s1, 4  ;;  %s236_s20 = scalar_lea.sflag (!%p923_p3), [#allocation3], %s944_s1 }
  0x2e   : > { %s239_s17 = scalar_lea.vmem (!%p923_p3), [#allocation2], %s523_s14 }
  0x2f   : > { %772 = dma.done.wait (%p884_p8), %s236_s20, 256  }
  0x30   : > { %774 = vsyncadd (%p884_p8), %s236_s20, 4294967040  ;;  %s245_s12 = sand.u32 1, %s864_s18   ;;  %s249_s27 = scalar_lea.vmem [#allocation5], %s523_s14 }
  0x31   : > { %s246_s26 = scalar_lea.sflag [#allocation6], %s245_s12 }
  0x32   : > { %776 = dma.done.wait (%p884_p8), %s246_s26, 384  }
  0x33   : > { %778 = vsyncadd (%p884_p8), %s246_s26, 4294966912  ;;  %s525_s28 = sshll.u32 %s944_s1, 3  ;;  %v306_v0 = vld [vmem:[%s239_s17] sm:$0xff]  ;;  %v307_v1 = vld [vmem:[%s239_s17 + $0x8] sm:$0xff]  ;;  %s540_s4 = smul.u32 24, %s944_s1 }
  0x34   : > { %v308_v2 = vld [vmem:[%s249_s27] sm:$0xff]  ;;  %v309_v3 = vld [vmem:[%s249_s27 + $0x8] sm:$0xff]  ;;  %s259_s19 = scalar_lea.vmem [#allocation7], %s525_s28  ;;  %s541_s24 = smul.u32 24, %s797_s15 }
  0x35   : > { %v314_v4 = vsub.f32 %v306_v0, %v308_v2  ;;  %v537_v5 = vld [vmem:[%s259_s19] sm:$0xff]   ;;  %v315_v6 = vsub.f32 %v307_v1, %v309_v3  ;;  %s959_s18 = scalar_lea.vmem [#allocation8], %s540_s4  ;;  %s367_s8 = scalar_lea.sflag [#allocation4], %s944_s1 }
  0x36   : > { %v538_v7 = vunpack.c.l.bf16 %v537_v5  ;;  %v539_v8 = vunpack.c.h.bf16 %v537_v5  ;;  %s378_s23 = scalar_lea.hbm %s1006_s3, %s541_s24  ;;  %s379_s15 = sshll.u32 %s959_s18, 4  ;;  %s380_s15 = int_to_ptr.vmem [resolvable:$true] %s379_s15 }
  0x37   : > { %v316_v9 = vmul.f32 1.442695, %v314_v4  ;;  %v318_v10 = vmul.f32 1.442695, %v315_v6  ;;  %s381_s7 = sshll.u32 %s378_s23, 4  ;;  %s739_s6 = scalar_lea.hbm %s1006_s3, 48  ;;  %s382_s7 = int_to_ptr.hbm [resolvable:$true] %s381_s7 }
  0x38   : > { %v363_v11 = vadd.f32 %v539_v8, %v538_v7  ;;  %s733_s10 = sshra.s32 %s382_s7, 4  ;;  %s734_s10 = int_to_ptr.hbm [resolvable:$true] %s733_s10 }
  0x39   : > { %621 = vpow2.f32 %v316_v9  ;;  %s735_s5 = scalar_lea.hbm %s734_s10, 24  ;;  %p740_p7 = scmp.lt.s32.totalorder %s734_s10, %s1006_s3 }
  0x3a   : > { %623 = vpow2.f32 %v318_v10  ;;  %529 = vst [vmem:[%s959_s18 + $0x10] sm:$0xff] %v363_v11  ;;  %p736_p4 = scmp.ne.s32.totalorder %s734_s10, %s735_s5  ;;  %p741_p8 = scmp.lt.s32.totalorder %s739_s6, %s735_s5 }
  0x3c   : > { %p737_p5 = pnand %p736_p4, %p888_p9  ;;  %p742_p10 = por %p741_p8, %p740_p7 }
  0x3e   : > { %p738_p6 = pneg %p737_p5 }
  0x3f   : > { %v622_v12 = vpop.eup %621 }
  0x40   : > { %v624_v13 = vpop.eup %623  ;;  %v320_v14 = vadd.f32 1.0, %v622_v12  ;;  %p743_p13 = pnand %p742_p10, %p738_p6 }
  0x41   : > { %v321_v15 = vadd.f32 1.0, %v624_v13 }
  0x42   : > { %625 = vrcp.f32 %v320_v14  ;;  %vm327_vm0 = vweird.f32 %v320_v14  ;;  %v333_v19 = vand.u32 2147483648, %v320_v14  ;;  %v331_v22 = vand.u32 2147483647, %v320_v14 }
  0x43   : > { %627 = vrcp.f32 %v321_v15  ;;  %v347_v23 = vand.u32 2147483648, %v321_v15  ;;  %vm341_vm2 = vweird.f32 %v321_v15  ;;  %v345_v25 = vand.u32 2147483647, %v321_v15 }
  0x44   : > { %v334_v27 = vor.u32 1.1754944e-38, %v333_v19  ;;  %vm332_vm5 = vcmp.eq.f32.partialorder %v331_v22, 8.507059e+37 }
  0x45   : > { %v348_v30 = vor.u32 1.1754944e-38, %v347_v23  ;;  %vm346_vm7 = vcmp.eq.f32.partialorder %v345_v25, 8.507059e+37 }
  0x48   : > { %v626_v16 = vpop.eup %625 }
  0x49   : > { %v628_v17 = vpop.eup %627  ;;  %v323_v18 = vmul.f32 %v626_v16, %v320_v14  ;;  %vm328_vm1 = vweird.f32 %v626_v16 }
  0x4a   : > { %v337_v20 = vmul.f32 %v628_v17, %v321_v15  ;;  %vm342_vm3 = vweird.f32 %v628_v17  ;;  %vm329_vm4 = vmor %vm327_vm0, %vm328_vm1 }
  0x4b   : > { %v324_v21 = vsub.f32 1.0, %v323_v18  ;;  %vm343_vm6 = vmor %vm341_vm2, %vm342_vm3 }
  0x4c   : > { %v338_v24 = vsub.f32 1.0, %v337_v20 }
  0x4d   : > { %v325_v26 = vmul.f32 %v626_v16, %v324_v21 }
  0x4e   : > { %v339_v28 = vmul.f32 %v628_v17, %v338_v24 }
  0x4f   : > { %v326_v29 = vadd.f32 %v626_v16, %v325_v26 }
  0x50   : > { %v340_v31 = vadd.f32 %v628_v17, %v339_v28 }
  0x51   : > { %v330_v32 = vsel %vm329_vm4, %v626_v16, %v326_v29 }
  0x52   : > { %v335_v33 = vsel %vm332_vm5, %v334_v27, %v330_v32  ;;  %v344_v34 = vsel %vm343_vm6, %v628_v17, %v340_v31 }
  0x53   : > { %v349_v35 = vsel %vm346_vm7, %v348_v30, %v344_v34  ;;  %v356_v36 = vmul.f32 %v538_v7, %v335_v33 }
  0x54   : > { %v351_v37 = vadd.f32 %v349_v35, %v335_v33  ;;  %v357_v38 = vmul.f32 %v539_v8, %v349_v35 }
  0x56   : > { %v358_v39 = vadd.f32 %v357_v38, %v356_v36  ;;  %353 = vst [vmem:[%s959_s18] sm:$0xff] %v351_v37 }
  0x58   : > { %527 = vst [vmem:[%s959_s18 + $0x8] sm:$0xff] %v358_v39 }
  0x59   : > { %746 = shalt.err (!%p743_p13)
}
  0x5a   : > { %s811_s1 = smov 128   ;;  %s812_s14 = smov 8  }
  0x5b   : > { %548 = dma.vmem_to_hbm [thread:$0]  (%p888_p9), %s380_s15, 384, %s382_s7, %s367_s8, %s811_s1, %s811_s1, %s812_s14  }
  0x5c PF: > { %s1027_s20 = sld [smem:[#allocation12_spill]]  ;;  %p561_p0 = pnand %p512_p12, %p895_p11 }
  0x5d   : > { %s1029_s12 = sld [smem:[#allocation14_spill]] }
  0x5e   : > { %p562_p1 = pneg %p561_p0 }
  0x62   : > { %s396_s26 = sand.u32 1, %s1027_s20  }
  0x63   : > { %s397_s27 = scalar_lea.sflag [#allocation4], %s396_s26 }
  0x64   : > { %780 = dma.done.wait (%p562_p1), %s397_s27, 384  }
  0x65   : > { %782 = vsyncadd (%p562_p1), %s397_s27, 4294966912  ;;  %s22_s17 = sadd.s32 1, %s1029_s12   ;;  %s1030_s28 = sld [smem:[#allocation13_spill]] }
  0x66   : > { %p19_p2 = scmp.ge.s32.totalorder %s22_s17, 4   ;;  %s1031_s14 = sld [smem:[#allocation16_spill]] }
  0x67   : > { %s1032_s25 = sld [smem:[#allocation15_spill]]  ;;  %s1033_s12 = smov %s789_s13 }
  0x68   : > { %s1035_s15 = smov %s801_s16 }
  0x69   :  { %21 = sbr.rel (!%p19_p2) target bundleno = 10 (0xa), region = 107 }
  0x6b   : > { %s1034_s13 = smov %s1030_s28 }
  0x6d   : > { %s1036_s16 = smov %s1032_s25 }
  0x6e   :  { %403 = vsyncpa [#allocation3], 1 }
  0x6f   :  { %405 = vsyncpa [#allocation3 + $0x1], 1 }
  0x70   :  { %406 = vsyncpa [#allocation6], 1 }
  0x71   :  { %408 = vsyncpa [#allocation6 + $0x1], 1 }
  0x72   :  { %409 = vsyncpa [#allocation4], 1 }
  0x73   :  { %411 = vsyncpa [#allocation4 + $0x1], 1 }

</bundles_post_ra>
